<compile_context>
chip_gen: v6e
topology: v6e:2x2x1
jax: 0.10.0
libtpu: 0.0.40
codegen_flags: <defaults>
</compile_context>

<pallas_src>
import jax
import jax.numpy as jnp
from jax.experimental import pallas as pl
from jax.experimental.pallas import tpu as pltpu

# ---------------- small synthetic config (mirrors FuXi.__init__ shapes) ----------
IN_FRAMES  = 2              # in_frames (T)
OUT_FRAMES = 1              # out_frames
STEP_RANGE = (2, 1, 1)      # step_range -> 3 decoders (short / medium / long)
C   = 4                     # atmospheric channels; last channel is "tp"
CC  = 2                     # constant-field channels (self.const)
H = W = 16                  # spatial (process_input hw == input hw -> no resize branch)
EMB = 8                     # temb embedding dim
HW  = H * W
K_IN = IN_FRAMES * C + IN_FRAMES * CC   # decoder fan-in  (input window + const, flattened t,c)
OC   = OUT_FRAMES * C                   # decoder fan-out (rearranged to (t c) h w, t=out_frames)
NUM_STEPS = sum(STEP_RANGE)
NUM_DECODERS = len(STEP_RANGE)
# step -> decoder-index table (which stage decoder runs at each autoregressive step)
DEC_FOR_STEP = tuple(i for i, f in enumerate(STEP_RANGE) for _ in range(f))
assert OUT_FRAMES == 1 and OC == C      # window-shift below assumes 1 output frame

# TODO(synk): F.interpolate bilinear resize (720x1440 / 721x1440 regrid) is not
# implemented; synthetic shapes are chosen so the resize branch is a no-op / identity.


# ---------------------------- fused Pallas kernel ---------------------------------
def _fuxi_forecast_kernel(x0_ref, w_ref, add_ref, ms_ref, out_ref):
    """Single invocation.  Layout: rows (sublanes) = channels, lanes = H*W.

    x0_ref : (IN_FRAMES*C, HW)        raw input window (channel-major)
    w_ref  : (NUM_DECODERS*OC, T*C)   per-decoder window-mixing weights
    add_ref: (NUM_STEPS*OC, HW)       hoisted per-step additive term
                                      (const contribution + temb proj + bias)
    ms_ref : (2*C, 1)                 rows [0:C] = mean, rows [C:2C] = std
    out_ref: (NUM_STEPS*C, HW)        de-normalized physical outputs
    """
    ms = ms_ref[...]
    mean_c = ms[:C, :]                                     # (C, 1)
    std_c  = ms[C:, :]                                     # (C, 1)
    w_all   = w_ref[...]                                   # (3*OC, T*C)
    add_all = add_ref[...]                                 # (NUM_STEPS*OC, HW)
    raw     = x0_ref[...]                                  # (T*C, HW)

    # ---- process_input: log1p on the tp row of each frame, then normalize --------
    frames = []                                            # register-carried window
    for t in range(IN_FRAMES):
        f  = raw[t * C:(t + 1) * C, :]                     # (C, HW) static slice
        tp = jnp.log1p(jnp.maximum(f[C - 1:C, :], 0.0))    # tp row only
        f  = jnp.concatenate([f[:C - 1, :], tp], axis=0)
        frames.append((f - mean_c) / std_c)

    # ---- statically unrolled autoregressive loop (all values stay in registers) --
    for s in range(NUM_STEPS):
        dec = DEC_FOR_STEP[s]                              # compile-time constant
        w   = w_all[dec * OC:(dec + 1) * OC, :]            # (OC, T*C) static slice
        y   = add_all[s * OC:(s + 1) * OC, :]              # (OC, HW)  static slice

        # 1x1-conv channel mixing, split per frame (avoids window concatenation)
        for t in range(IN_FRAMES):
            y = y + jnp.dot(w[:, t * C:(t + 1) * C], frames[t],
                            preferred_element_type=jnp.float32)

        # residual with the last (normalized) input frame:  output + input[:, -1:]
        y_norm = y + frames[-1]                            # (OC, HW)

        # window shift: cat([window, output])[-in_frames:] — pure register shuffle
        frames = frames[1:] + [y_norm]

        # process_output / normalize(inv=True): x*std + mean ; tp = clamp(exp(tp)-1, 0)
        d = y_norm * std_c + mean_c                        # (C, HW)
        base = s * C
        out_ref[base:base + C - 1, :] = d[:C - 1, :]       # lane-dense stores
        out_ref[base + C - 1:base + C, :] = jnp.maximum(jnp.exp(d[C - 1:C, :]) - 1.0, 0.0)


def fuxi_forecast(x0_cm, w_win, add_all, ms):
    vmem = pl.BlockSpec(memory_space=pltpu.MemorySpace.VMEM)
    return pl.pallas_call(
        _fuxi_forecast_kernel,
        out_shape=jax.ShapeDtypeStruct((NUM_STEPS * C, HW), jnp.float32),
        in_specs=[vmem, vmem, vmem, vmem],
        out_specs=vmem,
    )(x0_cm, w_win, add_all, ms)


# ---------------------------- FuXi.forward (host glue, one-time hoisted prep) -----
@jax.jit
def fuxi_forward(params, buffers, input_tchw, tembs):
    """inputs = (input, tembs); input: (T, C, H, W), tembs: (num_steps, EMB).
       Returns outputs: (1, num_steps, C, H, W) (de-normalized physical fields)."""
    mean_c = buffers["mean"].reshape(C, 1)
    std_c  = buffers["std"].reshape(C, 1)
    ms     = jnp.concatenate([mean_c, std_c], axis=0)                  # (2C, 1)

    const_cm  = buffers["const"].reshape(CC, HW)                       # (CC, HW)
    const_rep = jnp.tile(const_cm, (IN_FRAMES, 1))                     # (T*CC, HW)
    x0_cm     = input_tchw.reshape(IN_FRAMES * C, HW)                  # free NCHW reshape

    # per-decoder weights: split window-part / const-part; const part hoisted out
    w_t     = [jnp.transpose(d["w"]) for d in params["decoders"]]      # each (OC, K_IN)
    w_win   = jnp.concatenate([w[:, :IN_FRAMES * C] for w in w_t], axis=0)  # (3*OC, T*C)
    y_const = [w[:, IN_FRAMES * C:] @ const_rep for w in w_t]          # each (OC, HW)

    # hoisted per-step additive term: const contribution + temb projection + bias
    adds = []
    for s in range(NUM_STEPS):
        di = DEC_FOR_STEP[s]
        d  = params["decoders"][di]
        tb = (tembs[s][None, :] @ d["wt"]).reshape(OC, 1)              # (OC, 1)
        adds.append(y_const[di] + tb + d["b"].reshape(OC, 1))
    add_all = jnp.concatenate(adds, axis=0)                            # (NUM_STEPS*OC, HW)

    out = fuxi_forecast(x0_cm, w_win, add_all, ms)                     # (NUM_STEPS*C, HW)
    return out.reshape(NUM_STEPS, C, H, W)[None]                       # (1, steps, C, H, W)


# ---------------------------- pure-JAX reference (correctness check) --------------
def fuxi_forward_ref(params, buffers, input_tchw, tembs):
    mean = buffers["mean"].reshape(C, 1)
    std  = buffers["std"].reshape(C, 1)
    x = input_tchw
    x = x.at[:, -1].set(jnp.log1p(jnp.maximum(x[:, -1], 0.0)))
    window = (x - buffers["mean"]) / buffers["std"]                    # (T, C, H, W)
    const_cm = buffers["const"].reshape(CC, HW)
    outs, step = [], 0
    for i, f in enumerate(STEP_RANGE):
        dec = params["decoders"][i]
        for _ in range(f):
            xin = window.reshape(IN_FRAMES * C, HW)
            x_full = jnp.concatenate([xin] + [const_cm] * IN_FRAMES, axis=0)
            y = dec["w"].T @ x_full
            bias = (tembs[step][None, :] @ dec["wt"]).reshape(OC, 1) + dec["b"].reshape(OC, 1)
            y_norm = y + bias + window[-1].reshape(C, HW)
            d = y_norm * std + mean
            d = d.at[-1].set(jnp.maximum(jnp.exp(d[-1]) - 1.0, 0.0))
            outs.append(d.reshape(C, H, W))
            window = jnp.concatenate([window[1:], y_norm.reshape(1, C, H, W)], axis=0)
            step += 1
    return jnp.stack(outs)[None]


# ---------------------------- parameter / input setup -----------------------------
def make_params_and_buffers(key):
    decoders = []
    for i in range(NUM_DECODERS):
        k1, k2, k3 = jax.random.split(jax.random.fold_in(key, 100 + i), 3)
        decoders.append({
            "w":  0.1  * jax.random.normal(k1, (K_IN, OC), jnp.float32),
            "wt": 0.1  * jax.random.normal(k2, (EMB, OC), jnp.float32),
            "b":  0.01 * jax.random.normal(k3, (1, OC), jnp.float32),
        })
    kb1, kb2, kb3 = jax.random.split(jax.random.fold_in(key, 999), 3)
    buffers = {
        "mean":  0.1 * jax.random.normal(kb1, (C, 1, 1), jnp.float32),
        "std":   0.5 + jax.random.uniform(kb2, (C, 1, 1), jnp.float32),
        "const": jax.random.normal(kb3, (CC, H, W), jnp.float32),
    }
    return {"decoders": decoders}, buffers


if __name__ == "__main__":
    key = jax.random.PRNGKey(0)
    params, buffers = make_params_and_buffers(key)

    ki, kt = jax.random.split(jax.random.fold_in(key, 7), 2)
    input_tchw = jax.random.normal(ki, (IN_FRAMES, C, H, W), jnp.float32)
    tembs = jax.random.normal(kt, (NUM_STEPS, EMB), jnp.float32)

    outputs = fuxi_forward(params, buffers, input_tchw, tembs)
    outputs = jax.block_until_ready(outputs)

    assert outputs.shape == (1, NUM_STEPS, C, H, W)
    assert bool(jnp.all(jnp.isfinite(outputs)))
    # last channel ("tp") is clamped to >= 0 by the inverse normalization
    assert bool(jnp.all(outputs[:, :, -1] >= 0.0))

    # numerical check against the pure-JAX reference of the same forward pass
    ref = fuxi_forward_ref(params, buffers, input_tchw, tembs)
    max_err = float(jnp.max(jnp.abs(outputs - ref)))
    assert jnp.allclose(outputs, ref, rtol=1e-3, atol=1e-3), max_err

    print("KERNEL_OK")
</pallas_src>

<mosaic_0001>
module attributes {stable_mosaic.version = 11 : i64} {
  func.func @_fuxi_forecast_kernel(%arg0: memref<8x256xf32, #tpu.memory_space<vmem>>, %arg1: memref<12x8xf32, #tpu.memory_space<vmem>>, %arg2: memref<16x256xf32, #tpu.memory_space<vmem>>, %arg3: memref<8x1xf32, #tpu.memory_space<vmem>>, %arg4: memref<16x256xf32, #tpu.memory_space<vmem>>) attributes {dimension_semantics = [], scalar_prefetch = 0 : i64, scratch_operands = 0 : i64, tpu.core_type = #tpu.core_type<tc>} {
    %c0 = arith.constant 0 : index
    %c0_0 = arith.constant 0 : index
    %0 = vector.load %arg3[%c0, %c0_0] : memref<8x1xf32, #tpu.memory_space<vmem>>, vector<8x1xf32>
    %1 = vector.extract_strided_slice %0 {offsets = [0, 0], sizes = [4, 1], strides = [1, 1]} : vector<8x1xf32> to vector<4x1xf32>
    %2 = vector.extract_strided_slice %0 {offsets = [4, 0], sizes = [4, 1], strides = [1, 1]} : vector<8x1xf32> to vector<4x1xf32>
    %c0_1 = arith.constant 0 : index
    %c0_2 = arith.constant 0 : index
    %3 = vector.load %arg1[%c0_1, %c0_2] : memref<12x8xf32, #tpu.memory_space<vmem>>, vector<12x8xf32>
    %c0_3 = arith.constant 0 : index
    %c0_4 = arith.constant 0 : index
    %4 = vector.load %arg2[%c0_3, %c0_4] : memref<16x256xf32, #tpu.memory_space<vmem>>, vector<16x256xf32>
    %c0_5 = arith.constant 0 : index
    %c0_6 = arith.constant 0 : index
    %5 = vector.load %arg0[%c0_5, %c0_6] : memref<8x256xf32, #tpu.memory_space<vmem>>, vector<8x256xf32>
    %6 = vector.extract_strided_slice %5 {offsets = [0, 0], sizes = [4, 256], strides = [1, 1]} : vector<8x256xf32> to vector<4x256xf32>
    %7 = vector.extract_strided_slice %6 {offsets = [3, 0], sizes = [1, 256], strides = [1, 1]} : vector<4x256xf32> to vector<1x256xf32>
    %cst = arith.constant 0.000000e+00 : f32
    %8 = vector.broadcast %cst : f32 to vector<1x256xf32>
    %9 = arith.maximumf %7, %8 : vector<1x256xf32>
    %10 = math.log1p %9 : vector<1x256xf32>
    %11 = vector.extract_strided_slice %6 {offsets = [0, 0], sizes = [3, 256], strides = [1, 1]} : vector<4x256xf32> to vector<3x256xf32>
    %12 = tpu.concatenate %11, %10 in 0 : vector<3x256xf32>, vector<1x256xf32> -> vector<4x256xf32>
    %13 = vector.broadcast %1 : vector<4x1xf32> to vector<4x256xf32>
    %14 = arith.subf %12, %13 : vector<4x256xf32>
    %15 = vector.broadcast %2 : vector<4x1xf32> to vector<4x256xf32>
    %16 = arith.divf %14, %15 : vector<4x256xf32>
    %17 = vector.extract_strided_slice %5 {offsets = [4, 0], sizes = [4, 256], strides = [1, 1]} : vector<8x256xf32> to vector<4x256xf32>
    %18 = vector.extract_strided_slice %17 {offsets = [3, 0], sizes = [1, 256], strides = [1, 1]} : vector<4x256xf32> to vector<1x256xf32>
    %cst_7 = arith.constant 0.000000e+00 : f32
    %19 = vector.broadcast %cst_7 : f32 to vector<1x256xf32>
    %20 = arith.maximumf %18, %19 : vector<1x256xf32>
    %21 = math.log1p %20 : vector<1x256xf32>
    %22 = vector.extract_strided_slice %17 {offsets = [0, 0], sizes = [3, 256], strides = [1, 1]} : vector<4x256xf32> to vector<3x256xf32>
    %23 = tpu.concatenate %22, %21 in 0 : vector<3x256xf32>, vector<1x256xf32> -> vector<4x256xf32>
    %24 = vector.broadcast %1 : vector<4x1xf32> to vector<4x256xf32>
    %25 = arith.subf %23, %24 : vector<4x256xf32>
    %26 = vector.broadcast %2 : vector<4x1xf32> to vector<4x256xf32>
    %27 = arith.divf %25, %26 : vector<4x256xf32>
    %28 = vector.extract_strided_slice %3 {offsets = [0, 0], sizes = [4, 8], strides = [1, 1]} : vector<12x8xf32> to vector<4x8xf32>
    %29 = vector.extract_strided_slice %4 {offsets = [0, 0], sizes = [4, 256], strides = [1, 1]} : vector<16x256xf32> to vector<4x256xf32>
    %30 = vector.extract_strided_slice %28 {offsets = [0, 0], sizes = [4, 4], strides = [1, 1]} : vector<4x8xf32> to vector<4x4xf32>
    %cst_8 = arith.constant dense<0.000000e+00> : vector<4x256xf32>
    %31 = tpu.matmul %30, %16, %cst_8 {dimension_numbers = #tpu.dot_dimension_numbers<[1], [0], [0], [1], [0, 0, 1, 1], [], []>} : vector<4x4xf32>, vector<4x256xf32>, vector<4x256xf32> -> vector<4x256xf32>
    %32 = arith.addf %29, %31 : vector<4x256xf32>
    %33 = vector.extract_strided_slice %28 {offsets = [0, 4], sizes = [4, 4], strides = [1, 1]} : vector<4x8xf32> to vector<4x4xf32>
    %cst_9 = arith.constant dense<0.000000e+00> : vector<4x256xf32>
    %34 = tpu.matmul %33, %27, %cst_9 {dimension_numbers = #tpu.dot_dimension_numbers<[1], [0], [0], [1], [0, 0, 1, 1], [], []>} : vector<4x4xf32>, vector<4x256xf32>, vector<4x256xf32> -> vector<4x256xf32>
    %35 = arith.addf %32, %34 : vector<4x256xf32>
    %36 = arith.addf %35, %27 : vector<4x256xf32>
    %37 = vector.broadcast %2 : vector<4x1xf32> to vector<4x256xf32>
    %38 = arith.mulf %36, %37 : vector<4x256xf32>
    %39 = vector.broadcast %1 : vector<4x1xf32> to vector<4x256xf32>
    %40 = arith.addf %38, %39 : vector<4x256xf32>
    %41 = vector.extract_strided_slice %40 {offsets = [0, 0], sizes = [3, 256], strides = [1, 1]} : vector<4x256xf32> to vector<3x256xf32>
    %c0_10 = arith.constant 0 : index
    %c0_11 = arith.constant 0 : index
    %42 = vector.load %arg4[%c0_10, %c0_11] : memref<16x256xf32, #tpu.memory_space<vmem>>, vector<3x256xf32>
    tpu.vector_store %arg4[%c0_10, %c0_11], %41 {strides = array<i32>} : memref<16x256xf32, #tpu.memory_space<vmem>>, vector<3x256xf32>,
    %43 = vector.extract_strided_slice %40 {offsets = [3, 0], sizes = [1, 256], strides = [1, 1]} : vector<4x256xf32> to vector<1x256xf32>
    %44 = math.exp %43 : vector<1x256xf32>
    %cst_12 = arith.constant 1.000000e+00 : f32
    %45 = vector.broadcast %cst_12 : f32 to vector<1x256xf32>
    %46 = arith.subf %44, %45 : vector<1x256xf32>
    %cst_13 = arith.constant 0.000000e+00 : f32
    %47 = vector.broadcast %cst_13 : f32 to vector<1x256xf32>
    %48 = arith.maximumf %46, %47 : vector<1x256xf32>
    %c3 = arith.constant 3 : index
    %c0_14 = arith.constant 0 : index
    %49 = vector.load %arg4[%c3, %c0_14] : memref<16x256xf32, #tpu.memory_space<vmem>>, vector<1x256xf32>
    tpu.vector_store %arg4[%c3, %c0_14], %48 {strides = array<i32>} : memref<16x256xf32, #tpu.memory_space<vmem>>, vector<1x256xf32>,
    %50 = vector.extract_strided_slice %3 {offsets = [0, 0], sizes = [4, 8], strides = [1, 1]} : vector<12x8xf32> to vector<4x8xf32>
    %51 = vector.extract_strided_slice %4 {offsets = [4, 0], sizes = [4, 256], strides = [1, 1]} : vector<16x256xf32> to vector<4x256xf32>
    %52 = vector.extract_strided_slice %50 {offsets = [0, 0], sizes = [4, 4], strides = [1, 1]} : vector<4x8xf32> to vector<4x4xf32>
    %cst_15 = arith.constant dense<0.000000e+00> : vector<4x256xf32>
    %53 = tpu.matmul %52, %27, %cst_15 {dimension_numbers = #tpu.dot_dimension_numbers<[1], [0], [0], [1], [0, 0, 1, 1], [], []>} : vector<4x4xf32>, vector<4x256xf32>, vector<4x256xf32> -> vector<4x256xf32>
    %54 = arith.addf %51, %53 : vector<4x256xf32>
    %55 = vector.extract_strided_slice %50 {offsets = [0, 4], sizes = [4, 4], strides = [1, 1]} : vector<4x8xf32> to vector<4x4xf32>
    %cst_16 = arith.constant dense<0.000000e+00> : vector<4x256xf32>
    %56 = tpu.matmul %55, %36, %cst_16 {dimension_numbers = #tpu.dot_dimension_numbers<[1], [0], [0], [1], [0, 0, 1, 1], [], []>} : vector<4x4xf32>, vector<4x256xf32>, vector<4x256xf32> -> vector<4x256xf32>
    %57 = arith.addf %54, %56 : vector<4x256xf32>
    %58 = arith.addf %57, %36 : vector<4x256xf32>
    %59 = vector.broadcast %2 : vector<4x1xf32> to vector<4x256xf32>
    %60 = arith.mulf %58, %59 : vector<4x256xf32>
    %61 = vector.broadcast %1 : vector<4x1xf32> to vector<4x256xf32>
    %62 = arith.addf %60, %61 : vector<4x256xf32>
    %63 = vector.extract_strided_slice %62 {offsets = [0, 0], sizes = [3, 256], strides = [1, 1]} : vector<4x256xf32> to vector<3x256xf32>
    %c4 = arith.constant 4 : index
    %c0_17 = arith.constant 0 : index
    %64 = vector.load %arg4[%c4, %c0_17] : memref<16x256xf32, #tpu.memory_space<vmem>>, vector<3x256xf32>
    tpu.vector_store %arg4[%c4, %c0_17], %63 {strides = array<i32>} : memref<16x256xf32, #tpu.memory_space<vmem>>, vector<3x256xf32>,
    %65 = vector.extract_strided_slice %62 {offsets = [3, 0], sizes = [1, 256], strides = [1, 1]} : vector<4x256xf32> to vector<1x256xf32>
    %66 = math.exp %65 : vector<1x256xf32>
    %cst_18 = arith.constant 1.000000e+00 : f32
    %67 = vector.broadcast %cst_18 : f32 to vector<1x256xf32>
    %68 = arith.subf %66, %67 : vector<1x256xf32>
    %cst_19 = arith.constant 0.000000e+00 : f32
    %69 = vector.broadcast %cst_19 : f32 to vector<1x256xf32>
    %70 = arith.maximumf %68, %69 : vector<1x256xf32>
    %c7 = arith.constant 7 : index
    %c0_20 = arith.constant 0 : index
    %71 = vector.load %arg4[%c7, %c0_20] : memref<16x256xf32, #tpu.memory_space<vmem>>, vector<1x256xf32>
    tpu.vector_store %arg4[%c7, %c0_20], %70 {strides = array<i32>} : memref<16x256xf32, #tpu.memory_space<vmem>>, vector<1x256xf32>,
    %72 = vector.extract_strided_slice %3 {offsets = [4, 0], sizes = [4, 8], strides = [1, 1]} : vector<12x8xf32> to vector<4x8xf32>
    %73 = vector.extract_strided_slice %4 {offsets = [8, 0], sizes = [4, 256], strides = [1, 1]} : vector<16x256xf32> to vector<4x256xf32>
    %74 = vector.extract_strided_slice %72 {offsets = [0, 0], sizes = [4, 4], strides = [1, 1]} : vector<4x8xf32> to vector<4x4xf32>
    %cst_21 = arith.constant dense<0.000000e+00> : vector<4x256xf32>
    %75 = tpu.matmul %74, %36, %cst_21 {dimension_numbers = #tpu.dot_dimension_numbers<[1], [0], [0], [1], [0, 0, 1, 1], [], []>} : vector<4x4xf32>, vector<4x256xf32>, vector<4x256xf32> -> vector<4x256xf32>
    %76 = arith.addf %73, %75 : vector<4x256xf32>
    %77 = vector.extract_strided_slice %72 {offsets = [0, 4], sizes = [4, 4], strides = [1, 1]} : vector<4x8xf32> to vector<4x4xf32>
    %cst_22 = arith.constant dense<0.000000e+00> : vector<4x256xf32>
    %78 = tpu.matmul %77, %58, %cst_22 {dimension_numbers = #tpu.dot_dimension_numbers<[1], [0], [0], [1], [0, 0, 1, 1], [], []>} : vector<4x4xf32>, vector<4x256xf32>, vector<4x256xf32> -> vector<4x256xf32>
    %79 = arith.addf %76, %78 : vector<4x256xf32>
    %80 = arith.addf %79, %58 : vector<4x256xf32>
    %81 = vector.broadcast %2 : vector<4x1xf32> to vector<4x256xf32>
    %82 = arith.mulf %80, %81 : vector<4x256xf32>
    %83 = vector.broadcast %1 : vector<4x1xf32> to vector<4x256xf32>
    %84 = arith.addf %82, %83 : vector<4x256xf32>
    %85 = vector.extract_strided_slice %84 {offsets = [0, 0], sizes = [3, 256], strides = [1, 1]} : vector<4x256xf32> to vector<3x256xf32>
    %c8 = arith.constant 8 : index
    %c0_23 = arith.constant 0 : index
    %86 = vector.load %arg4[%c8, %c0_23] : memref<16x256xf32, #tpu.memory_space<vmem>>, vector<3x256xf32>
    tpu.vector_store %arg4[%c8, %c0_23], %85 {strides = array<i32>} : memref<16x256xf32, #tpu.memory_space<vmem>>, vector<3x256xf32>,
    %87 = vector.extract_strided_slice %84 {offsets = [3, 0], sizes = [1, 256], strides = [1, 1]} : vector<4x256xf32> to vector<1x256xf32>
    %88 = math.exp %87 : vector<1x256xf32>
    %cst_24 = arith.constant 1.000000e+00 : f32
    %89 = vector.broadcast %cst_24 : f32 to vector<1x256xf32>
    %90 = arith.subf %88, %89 : vector<1x256xf32>
    %cst_25 = arith.constant 0.000000e+00 : f32
    %91 = vector.broadcast %cst_25 : f32 to vector<1x256xf32>
    %92 = arith.maximumf %90, %91 : vector<1x256xf32>
    %c11 = arith.constant 11 : index
    %c0_26 = arith.constant 0 : index
    %93 = vector.load %arg4[%c11, %c0_26] : memref<16x256xf32, #tpu.memory_space<vmem>>, vector<1x256xf32>
    tpu.vector_store %arg4[%c11, %c0_26], %92 {strides = array<i32>} : memref<16x256xf32, #tpu.memory_space<vmem>>, vector<1x256xf32>,
    %94 = vector.extract_strided_slice %3 {offsets = [8, 0], sizes = [4, 8], strides = [1, 1]} : vector<12x8xf32> to vector<4x8xf32>
    %95 = vector.extract_strided_slice %4 {offsets = [12, 0], sizes = [4, 256], strides = [1, 1]} : vector<16x256xf32> to vector<4x256xf32>
    %96 = vector.extract_strided_slice %94 {offsets = [0, 0], sizes = [4, 4], strides = [1, 1]} : vector<4x8xf32> to vector<4x4xf32>
    %cst_27 = arith.constant dense<0.000000e+00> : vector<4x256xf32>
    %97 = tpu.matmul %96, %58, %cst_27 {dimension_numbers = #tpu.dot_dimension_numbers<[1], [0], [0], [1], [0, 0, 1, 1], [], []>} : vector<4x4xf32>, vector<4x256xf32>, vector<4x256xf32> -> vector<4x256xf32>
    %98 = arith.addf %95, %97 : vector<4x256xf32>
    %99 = vector.extract_strided_slice %94 {offsets = [0, 4], sizes = [4, 4], strides = [1, 1]} : vector<4x8xf32> to vector<4x4xf32>
    %cst_28 = arith.constant dense<0.000000e+00> : vector<4x256xf32>
    %100 = tpu.matmul %99, %80, %cst_28 {dimension_numbers = #tpu.dot_dimension_numbers<[1], [0], [0], [1], [0, 0, 1, 1], [], []>} : vector<4x4xf32>, vector<4x256xf32>, vector<4x256xf32> -> vector<4x256xf32>
    %101 = arith.addf %98, %100 : vector<4x256xf32>
    %102 = arith.addf %101, %80 : vector<4x256xf32>
    %103 = vector.broadcast %2 : vector<4x1xf32> to vector<4x256xf32>
    %104 = arith.mulf %102, %103 : vector<4x256xf32>
    %105 = vector.broadcast %1 : vector<4x1xf32> to vector<4x256xf32>
    %106 = arith.addf %104, %105 : vector<4x256xf32>
    %107 = vector.extract_strided_slice %106 {offsets = [0, 0], sizes = [3, 256], strides = [1, 1]} : vector<4x256xf32> to vector<3x256xf32>
    %c12 = arith.constant 12 : index
    %c0_29 = arith.constant 0 : index
    %108 = vector.load %arg4[%c12, %c0_29] : memref<16x256xf32, #tpu.memory_space<vmem>>, vector<3x256xf32>
    tpu.vector_store %arg4[%c12, %c0_29], %107 {strides = array<i32>} : memref<16x256xf32, #tpu.memory_space<vmem>>, vector<3x256xf32>,
    %109 = vector.extract_strided_slice %106 {offsets = [3, 0], sizes = [1, 256], strides = [1, 1]} : vector<4x256xf32> to vector<1x256xf32>
    %110 = math.exp %109 : vector<1x256xf32>
    %cst_30 = arith.constant 1.000000e+00 : f32
    %111 = vector.broadcast %cst_30 : f32 to vector<1x256xf32>
    %112 = arith.subf %110, %111 : vector<1x256xf32>
    %cst_31 = arith.constant 0.000000e+00 : f32
    %113 = vector.broadcast %cst_31 : f32 to vector<1x256xf32>
    %114 = arith.maximumf %112, %113 : vector<1x256xf32>
    %c15 = arith.constant 15 : index
    %c0_32 = arith.constant 0 : index
    %115 = vector.load %arg4[%c15, %c0_32] : memref<16x256xf32, #tpu.memory_space<vmem>>, vector<1x256xf32>
    tpu.vector_store %arg4[%c15, %c0_32], %114 {strides = array<i32>} : memref<16x256xf32, #tpu.memory_space<vmem>>, vector<1x256xf32>,
    return
  }
}

</mosaic_0001>

<bundles_post_ra>
// kernel: tile.7
= control target key start
LH: loop header
LB: loop body
LE: loop exit
PB: predicated region body
PF: predicated region fallthrough
CT: control target
= control target key end

     0   :  { %v104_v14 = vmov 0.0   ;;  %s133_s0 = inlined_call_operand.vmem [shape: bf16[2,2,256], index: 0, kind: input, shape index: {}]   ;;  %s134_s1 = inlined_call_operand.vmem [shape: bf16[4,256], index: 1, kind: output, shape index: {}]  }
   0x1   :  { %v99_v0 = vld [vmem:[%s133_s0 + $0x3] sm:$0x1]  ;;  %v100_v1 = vld [vmem:[%s133_s0 + $0x2] sm:$0x1]  ;;  %v101_v2 = vld [vmem:[%s133_s0 + $0x1] sm:$0x1] }
   0x2   :  { %v18_v3 = vunpack.c.l.bf16 %v99_v0  ;;  %v34_v4 = vunpack.c.l.bf16 %v100_v1  ;;  %v49_v5 = vunpack.c.l.bf16 %v101_v2  ;;  %v62_v6 = vld [vmem:[%s133_s0] sm:$0x1] }
   0x3   :  { %v63_v7 = vunpack.c.l.bf16 %v62_v6 }
   0x4   :  { %21 = vst [vmem:[#allocation1 + $0x8] sm:$0x3] %v18_v3  ;;  %37 = vst [vmem:[#allocation1 + $0x18] sm:$0x3] %v34_v4 }
   0x5   :  { %52 = vst [vmem:[#allocation1] sm:$0x3] %v49_v5  ;;  %65 = vst [vmem:[#allocation1 + $0x10] sm:$0x3] %v63_v7 }
   0xb   :  { %v73_v9 = vld [vmem:[#allocation1 + $0x18] sm:$0x3]   ;;  %v77_v10 = vld [vmem:[#allocation1 + $0x8] sm:$0x3]  }
   0xc   :  { %v69_v8 = vld [vmem:[#allocation1] sm:$0x3]   ;;  %v66_v11 = vld [vmem:[#allocation1 + $0x10] sm:$0x3]   ;;  %75 = vst [vmem:[#allocation0 + $0x2] sm:$0x3] %v73_v9  }
   0xd   :  { %71 = vst [vmem:[#allocation0 + $0x8] sm:$0x3] %v69_v8   ;;  %79 = vst [vmem:[#allocation0 + $0xa] sm:$0x3] %v77_v10  }
   0xe   :  { %67 = vst [vmem:[#allocation0] sm:$0x3] %v66_v11  }
  0x14   :  { %v91_v12 = vld [vmem:[#allocation0 + $0x8] sm:$0xf] }
  0x15   :  { %v85_v13 = vld [vmem:[#allocation0] sm:$0xf]  ;;  %v92_v15 = vpack.c.bf16 %v104_v14, %v91_v12 }
  0x16   :  { %v86_v16 = vpack.c.bf16 %v104_v14, %v85_v13 }
  0x17   :  { %102 = vst [vmem:[%s134_s1 + $0x2] sm:$0x3] %v92_v15 }
  0x18   :  { %89 = vst [vmem:[%s134_s1] sm:$0x3] %v86_v16 }

// kernel: fuxi_forward.1
= control target key start
LH: loop header
LB: loop body
LE: loop exit
PB: predicated region body
PF: predicated region fallthrough
CT: control target
= control target key end

     0   :  { %v979_v0 = vmov 0   ;;  %s980_s19 = smov 124   ;;  %v981_v3 = vmov 0.0   ;;  %vm46_vm2 = vcmask 1042432   ;;  %vm83_vm3 = vcmask 1043456   ;;  %s1160_s3 = inlined_call_operand.vmem [shape: f32[8,1], index: 3, kind: input, shape index: {}]   ;;  %s1161_s1 = inlined_call_operand.vmem [shape: f32[12,8], index: 1, kind: input, shape index: {}]   ;;  %s1162_s0 = inlined_call_operand.vmem [shape: f32[8,256], index: 0, kind: input, shape index: {}]   ;;  %s1163_s2 = inlined_call_operand.vmem [shape: f32[16,256], index: 2, kind: input, shape index: {}]   ;;  %s1164_s4 = inlined_call_operand.vmem [shape: f32[16,256], index: 4, kind: output, shape index: {}]  }
   0x1   :  { %956 = vset.pattern.permute.xlu0 %v979_v0  ;;  %v17_v1 = vld [vmem:[%s1160_s3] sm:$0xff]  ;;  %154 = vmatprep.mubr.f32.mxu0 %v981_v3  ;;  %v25_v5 = vld [vmem:[%s1162_s0 + $0x8] sm:$0xff]  ;;  %vm79_vm4 = vcmask 31744   ;;  %v982_v63 = vmov 1966171168  }
   0x2   :  { %51 = vperm.xlu0 %956, %v17_v1   ;;  %v1014_v2 = vld [vmem:[%s1161_s1] sm:$0xff]  ;;  %237 = vmatprep.mubr.f32.mxu1 %v981_v3  ;;  %v27_v7 = vmax.f32 %v25_v5, 0.0  ;;  %v64_v27 = vrot.slane %v25_v5, 4  ;;  %v21_v48 = vld [vmem:[%s1163_s2 + $0x8] sm:$0xff]  ;;  %v266_v0 = vunpack.c.l.s4 %v982_v63  ;;  %v268_v1 = vlaneseq }
   0x3   :  { %v24_v4 = vld [vmem:[%s1162_s0] sm:$0xff]  ;;  %v496_v44 = vrot.slane %v1014_v2, 4 }
   0x4   :  { %v26_v6 = vmax.f32 %v24_v4, 0.0  ;;  %v37_v9 = vadd.f32 1.0, %v27_v7  ;;  %v40_v11 = vmul.f32 -0.5, %v27_v7  ;;  %v43_v16 = vand.u32 2147483647, %v27_v7  ;;  %v20_v45 = vld [vmem:[%s1163_s2] sm:$0xff] }
   0x5   :  { %v63_v26 = vrot.slane %v24_v4, 4  ;;  %572 = vrot.lane.b32.xlu1 %v496_v44, %s980_s19  ;;  %vm1080_vm5 = vcmp.lt.s32.totalorder %v268_v1, 256 }
   0x6   :  { %163 = vrot.lane.b32.xlu0 %v1014_v2, %s980_s19  ;;  %v28_v8 = vadd.f32 1.0, %v26_v6  ;;  %v31_v10 = vmul.f32 -0.5, %v26_v6  ;;  %v41_v14 = vadd.f32 1.0, %v40_v11  ;;  %v34_v17 = vand.u32 2147483647, %v26_v6 }
   0x7   :  { %vm44_vm0 = vcmp.lt.f32.partialorder %v43_v16, 0.0004427343 }
   0x8   :  { %957 = vlog2.f32 %v28_v8  ;;  %v32_v12 = vadd.f32 1.0, %v31_v10  ;;  %v42_v22 = vmul.f32 %v41_v14, %v27_v7  ;;  %vm35_vm1 = vcmp.lt.f32.partialorder %v34_v17, 0.0004427343 }
   0x9   :  { %959 = vlog2.f32 %v37_v9 }
   0xa   :  { %v33_v19 = vmul.f32 %v32_v12, %v26_v6  ;;  %v269_v6 = vshrl.u32 %v268_v1, 7 }
  0x15   :  { %v958_v13 = vpop.eup %957 }
  0x16   :  { %v960_v15 = vpop.eup %959  ;;  %v30_v23 = vmul.f32 0.6931472, %v958_v13 }
  0x17   :  { %v39_v21 = vmul.f32 0.6931472, %v960_v15 }
  0x18   :  { %v36_v25 = vsel %vm35_vm1, %v33_v19, %v30_v23  ;;  %v19_v19 = vld [vmem:[%s1161_s1 + $0x8] sm:$0xf] }
  0x19   :  { %v45_v24 = vsel %vm44_vm0, %v42_v22, %v39_v21  ;;  %v69_v29 = vrot.slane %v36_v25, 4  ;;  %v47_v32 = vsel %vm46_vm2, %v24_v4, %v36_v25  ;;  %780 = vrot.lane.b32.xlu1 %v19_v19, %s980_s19 }
  0x1a   :  { %v70_v28 = vrot.slane %v45_v24, 4  ;;  %v48_v30 = vsel %vm46_vm2, %v25_v5, %v45_v24  ;;  %v267_v5 = vunpack.c.0.s8 %v266_v0 }
  0x1b   :  { %v73_v33 = vsel %vm46_vm2, %v63_v26, %v69_v29 }
  0x1c   :  { %v74_v31 = vsel %vm46_vm2, %v64_v27, %v70_v28  ;;  %v1076_v11 = vsub.s32 %v267_v5, %v269_v6 }
  0x7d   :  { %v1026_v18 = vpop.permute.xlu0 %51 }
  0x7e   :  { %v1029_v20 = vrot.slane %v1026_v18, 4  ;;  %v55_v34 = vsub.f32 %v48_v30, %v1026_v18  ;;  %v76_v35 = vsub.f32 %v74_v31, %v1026_v18  ;;  %v54_v36 = vsub.f32 %v47_v32, %v1026_v18 }
  0x7f   :  { %v75_v37 = vsub.f32 %v73_v33, %v1026_v18 }
  0x80   :  { %961 = vrcp.f32 %v1029_v20 }
  0x81   :  { %v164_v43 = vpop.permute.xlu0 %163 }
  0x8d   :  { %v962_v38 = vpop.eup %961 }
  0x8e   :  { %v60_v39 = vmul.f32 %v962_v38, %v55_v34  ;;  %v78_v40 = vmul.f32 %v962_v38, %v76_v35  ;;  %v59_v41 = vmul.f32 %v962_v38, %v54_v36  ;;  %v77_v42 = vmul.f32 %v962_v38, %v75_v37 }
  0x90   :  { %916 = vmatprep.subr.msk.mxu0 %vm83_vm3, %v60_v39  ;;  %919 = vmatprep.subr.msk.mxu1 %vm83_vm3, %v78_v40 }
  0x91   :  { %917 = vmatpush1.msk.msra.mxu0 %vm83_vm3, %v59_v41  ;;  %920 = vmatpush1.msk.msra.mxu1 %vm83_vm3, %v77_v42 }
  0x92   :  { %918 = vmatmul.mubr.msk.f32.vlgmr.msra.gmra.mxu0 %vm79_vm4, %v1014_v2  ;;  %921 = vmatmul.mubr.msk.f32.vlgmr.msra.gmra.mxu1 %vm79_vm4, %v164_v43 }
  0x93   :  { %925 = vmatprep.subr.msk.mxu0 %vm83_vm3, %v78_v40  ;;  %353 = vmatprep.mubr.f32.mxu0 %v981_v3 }
  0x94   :  { %926 = vmatpush1.msk.msra.mxu0 %vm83_vm3, %v77_v42  ;;  %438 = vmatprep.mubr.f32.mxu1 %v981_v3 }
  0x96   :  { %927 = vmatmul.mubr.msk.f32.vlgmr.msra.gmra.mxu0 %vm79_vm4, %v1014_v2 }
  0x97   :  { %563 = vmatprep.mubr.f32.mxu0 %v981_v3 }
 0x152   :  { %v156_v46 = vpop.f32.mrf.mxu0  ;;  %v239_v47 = vpop.f32.mrf.mxu1 }
 0x153   :  { %v161_v49 = vadd.f32 %v156_v46, %v20_v45 }
 0x154   :  { %v158_v50 = vpop.f32.mrf.mxu0  ;;  %v241_v53 = vpop.f32.mrf.mxu1 }
 0x155   :  { %v244_v51 = vadd.f32 %v239_v47, %v161_v49  ;;  %v162_v52 = vadd.f32 %v158_v50, %v21_v48 }
 0x156   :  { %v355_v21 = vpop.f32.mrf.mxu0 }
 0x157   :  { %v246_v54 = vadd.f32 %v244_v51, %v77_v42  ;;  %v245_v55 = vadd.f32 %v241_v53, %v162_v52  ;;  %v362_v22 = vrot.slane %v355_v21, 4  ;;  %v573_v42 = vpop.permute.xlu1 %572 }
 0x158   :  { %v357_v23 = vpop.f32.mrf.mxu0 }
 0x159   :  { %v248_v56 = vmul.f32 %v246_v54, %v1029_v20  ;;  %v247_v57 = vadd.f32 %v245_v55, %v78_v40  ;;  %v366_v24 = vadd.f32 %v362_v22, %v20_v45  ;;  %v363_v25 = vrot.slane %v357_v23, 4 }
 0x15a   :  { %v453_v31 = vrot.slane %v246_v54, 4 }
 0x15b   :  { %v250_v58 = vadd.f32 %v248_v56, %v1026_v18  ;;  %v249_v59 = vmul.f32 %v247_v57, %v1029_v20  ;;  %928 = vmatprep.subr.msk.mxu1 %vm83_vm3, %v247_v57  ;;  %934 = vmatprep.subr.msk.mxu0 %vm83_vm3, %v247_v57  ;;  %v367_v29 = vadd.f32 %v363_v25, %v21_v48  ;;  %v454_v35 = vrot.slane %v247_v57, 4  ;;  %v781_v6 = vpop.permute.xlu1 %780 }
 0x15c   :  { %929 = vmatpush1.msk.msra.mxu1 %vm83_vm3, %v246_v54  ;;  %935 = vmatpush1.msk.msra.mxu0 %vm83_vm3, %v246_v54 }
 0x15d   :  { %252 = vst [vmem:[%s1164_s4] sm:$0x7] %v250_v58  ;;  %v254_v60 = vmul.f32 1.442695, %v250_v58  ;;  %v251_v61 = vadd.f32 %v249_v59, %v1026_v18  ;;  %930 = vmatmul.mubr.msk.f32.vlgmr.msra.gmra.mxu1 %vm79_vm4, %v164_v43  ;;  %936 = vmatmul.mubr.msk.f32.vlgmr.msra.gmra.mxu0 %vm79_vm4, %v496_v44  ;;  %v23_v59 = vld [vmem:[%s1163_s2 + $0x18] sm:$0xff] }
 0x15e   :  { %648 = vmatprep.mubr.f32.mxu1 %v981_v3  ;;  %765 = vmatprep.mubr.f32.mxu0 %v981_v3 }
 0x15f   :  { %963 = vpow2.f32 %v254_v60  ;;  %253 = vst [vmem:[%s1164_s4 + $0x8] sm:$0x7] %v251_v61  ;;  %v256_v62 = vmul.f32 1.442695, %v251_v61 }
 0x161   :  { %965 = vpow2.f32 %v256_v62 }
 0x16c   :  { %v964_v2 = vpop.eup %963 }
 0x16d   :  { %v922_v4 = vadd.f32 -1.0, %v964_v2 }
 0x16e   :  { %v966_v7 = vpop.eup %965 }
 0x16f   :  { %v923_v8 = vadd.f32 -1.0, %v966_v7  ;;  %v260_v9 = vmax.f32 %v922_v4, 0.0 }
 0x171   :  { %v261_v10 = vmax.f32 %v923_v8, 0.0 }
 0x173   :  { %v264_v12 = vcombine.low %v260_v9, %v261_v10 }
 0x175   :  { %v271_v13 = vrot.slane %v264_v12, %v1076_v11 }
 0x177   :  { %v272_v14 = vcombine.high %v271_v13, %v271_v13 }
 0x179   :  { %v279_v15 = vrot.slane %v272_v14, %v1076_v11 }
 0x17b   :  { %v280_v17 = vcombine.high %v279_v15, %v279_v15 }
 0x17d   :  { %924 = vst.msk [vmem:[%s1164_s4 + $0x3] ss:$8 sm:$0x3] %vm1080_vm5, %v280_v17 }
 0x21d   :  { %v440_v26 = vpop.f32.mrf.mxu1  ;;  %v565_v57 = vpop.f32.mrf.mxu0 }
 0x21e   :  { %v447_v27 = vrot.slane %v440_v26, 4 }
 0x21f   :  { %v442_v28 = vpop.f32.mrf.mxu1  ;;  %v567_v60 = vpop.f32.mrf.mxu0 }
 0x220   :  { %v451_v30 = vadd.f32 %v447_v27, %v366_v24  ;;  %v448_v32 = vrot.slane %v442_v28, 4  ;;  %v571_v62 = vadd.f32 %v567_v60, %v23_v59 }
 0x222   :  { %v457_v33 = vadd.f32 %v453_v31, %v451_v30  ;;  %v452_v34 = vadd.f32 %v448_v32, %v367_v29 }
 0x224   :  { %v459_v36 = vmul.f32 %v457_v33, %v1026_v18  ;;  %v458_v37 = vadd.f32 %v454_v35, %v452_v34  ;;  %v576_v41 = vrot.slane %v457_v33, 4 }
 0x226   :  { %v461_v38 = vadd.f32 %v459_v36, %v1029_v20  ;;  %v460_v39 = vmul.f32 %v458_v37, %v1026_v18  ;;  %v577_v40 = vrot.slane %v458_v37, 4 }
 0x228   :  { %463 = vst [vmem:[%s1164_s4] sm:$0x70] %v461_v38  ;;  %v465_v43 = vmul.f32 1.442695, %v461_v38  ;;  %v462_v44 = vadd.f32 %v460_v39, %v1029_v20  ;;  %937 = vmatprep.subr.msk.mxu1 %vm83_vm3, %v577_v40  ;;  %943 = vmatprep.subr.msk.mxu0 %vm83_vm3, %v577_v40 }
 0x229   :  { %938 = vmatpush1.msk.msra.mxu1 %vm83_vm3, %v576_v41  ;;  %944 = vmatpush1.msk.msra.mxu0 %vm83_vm3, %v576_v41 }
 0x22a   :  { %967 = vpow2.f32 %v465_v43  ;;  %464 = vst [vmem:[%s1164_s4 + $0x8] sm:$0x70] %v462_v44  ;;  %v467_v45 = vmul.f32 1.442695, %v462_v44  ;;  %939 = vmatmul.mubr.msk.f32.vlgmr.msra.gmra.mxu1 %vm79_vm4, %v573_v42  ;;  %945 = vmatmul.mubr.msk.f32.vlgmr.msra.gmra.mxu0 %vm79_vm4, %v19_v19 }
 0x22b   :  { %854 = vmatprep.mubr.f32.mxu1 %v981_v3  ;;  %v22_v3 = vld [vmem:[%s1163_s2 + $0x10] sm:$0xff] }
 0x22c   :  { %969 = vpow2.f32 %v467_v45  ;;  %v570_v58 = vadd.f32 %v565_v57, %v22_v3 }
 0x237   :  { %v968_v46 = vpop.eup %967 }
 0x238   :  { %v931_v47 = vadd.f32 -1.0, %v968_v46 }
 0x239   :  { %v970_v48 = vpop.eup %969 }
 0x23a   :  { %v932_v49 = vadd.f32 -1.0, %v970_v48  ;;  %v471_v50 = vmax.f32 %v931_v47, 0.0 }
 0x23c   :  { %v472_v51 = vmax.f32 %v932_v49, 0.0 }
 0x23e   :  { %v475_v52 = vcombine.high %v471_v50, %v472_v51 }
 0x240   :  { %v482_v53 = vrot.slane %v475_v52, %v1076_v11 }
 0x242   :  { %v483_v54 = vcombine.high %v482_v53, %v482_v53 }
 0x244   :  { %v490_v55 = vrot.slane %v483_v54, %v1076_v11 }
 0x246   :  { %v491_v56 = vcombine.high %v490_v55, %v490_v55 }
 0x248   :  { %933 = vst.msk [vmem:[%s1164_s4 + $0x7] ss:$8 sm:$0x3] %vm1080_vm5, %v491_v56 }
 0x2ea   :  { %v650_v61 = vpop.f32.mrf.mxu1  ;;  %v767_v27 = vpop.f32.mrf.mxu0 }
 0x2eb   :  { %v655_v63 = vadd.f32 %v650_v61, %v570_v58  ;;  %v774_v28 = vrot.slane %v767_v27, 4 }
 0x2ec   :  { %v652_v0 = vpop.f32.mrf.mxu1  ;;  %v769_v29 = vpop.f32.mrf.mxu0 }
 0x2ed   :  { %v659_v1 = vadd.f32 %v655_v63, %v576_v41  ;;  %v656_v2 = vadd.f32 %v652_v0, %v571_v62  ;;  %v778_v30 = vadd.f32 %v774_v28, %v22_v3  ;;  %v775_v31 = vrot.slane %v769_v29, 4 }
 0x2ef   :  { %v661_v4 = vmul.f32 %v659_v1, %v1029_v20  ;;  %v660_v5 = vadd.f32 %v656_v2, %v577_v40  ;;  %v779_v35 = vadd.f32 %v775_v31, %v23_v59  ;;  %v869_v37 = vrot.slane %v659_v1, 4 }
 0x2f1   :  { %v663_v7 = vadd.f32 %v661_v4, %v1026_v18  ;;  %v662_v8 = vmul.f32 %v660_v5, %v1029_v20  ;;  %946 = vmatprep.subr.msk.mxu1 %vm83_vm3, %v660_v5  ;;  %v870_v41 = vrot.slane %v660_v5, 4 }
 0x2f2   :  { %947 = vmatpush1.msk.msra.mxu1 %vm83_vm3, %v659_v1 }
 0x2f3   :  { %665 = vst [vmem:[%s1164_s4 + $0x10] sm:$0x7] %v663_v7  ;;  %v667_v9 = vmul.f32 1.442695, %v663_v7  ;;  %v664_v10 = vadd.f32 %v662_v8, %v1026_v18  ;;  %948 = vmatmul.mubr.msk.f32.vlgmr.msra.gmra.mxu1 %vm79_vm4, %v781_v6 }
 0x2f5   :  { %971 = vpow2.f32 %v667_v9  ;;  %666 = vst [vmem:[%s1164_s4 + $0x18] sm:$0x7] %v664_v10  ;;  %v669_v12 = vmul.f32 1.442695, %v664_v10 }
 0x2f7   :  { %973 = vpow2.f32 %v669_v12 }
 0x302   :  { %v972_v13 = vpop.eup %971 }
 0x303   :  { %v940_v14 = vadd.f32 -1.0, %v972_v13 }
 0x304   :  { %v974_v15 = vpop.eup %973 }
 0x305   :  { %v941_v17 = vadd.f32 -1.0, %v974_v15  ;;  %v673_v19 = vmax.f32 %v940_v14, 0.0 }
 0x307   :  { %v674_v21 = vmax.f32 %v941_v17, 0.0 }
 0x309   :  { %v677_v22 = vcombine.low %v673_v19, %v674_v21 }
 0x30b   :  { %v684_v23 = vrot.slane %v677_v22, %v1076_v11 }
 0x30d   :  { %v685_v24 = vcombine.high %v684_v23, %v684_v23 }
 0x30f   :  { %v692_v25 = vrot.slane %v685_v24, %v1076_v11 }
 0x311   :  { %v693_v26 = vcombine.high %v692_v25, %v692_v25 }
 0x313   :  { %942 = vst.msk [vmem:[%s1164_s4 + $0x13] ss:$8 sm:$0x3] %vm1080_vm5, %v693_v26 }
 0x3b3   :  { %v856_v32 = vpop.f32.mrf.mxu1 }
 0x3b4   :  { %v863_v33 = vrot.slane %v856_v32, 4 }
 0x3b5   :  { %v858_v34 = vpop.f32.mrf.mxu1 }
 0x3b6   :  { %v867_v36 = vadd.f32 %v863_v33, %v778_v30  ;;  %v864_v38 = vrot.slane %v858_v34, 4 }
 0x3b8   :  { %v873_v39 = vadd.f32 %v869_v37, %v867_v36  ;;  %v868_v40 = vadd.f32 %v864_v38, %v779_v35 }
 0x3ba   :  { %v875_v42 = vmul.f32 %v873_v39, %v1026_v18  ;;  %v874_v43 = vadd.f32 %v870_v41, %v868_v40 }
 0x3bc   :  { %v877_v44 = vadd.f32 %v875_v42, %v1029_v20  ;;  %v876_v45 = vmul.f32 %v874_v43, %v1026_v18 }
 0x3be   :  { %879 = vst [vmem:[%s1164_s4 + $0x10] sm:$0x70] %v877_v44  ;;  %v881_v46 = vmul.f32 1.442695, %v877_v44  ;;  %v878_v47 = vadd.f32 %v876_v45, %v1029_v20 }
 0x3c0   :  { %975 = vpow2.f32 %v881_v46  ;;  %880 = vst [vmem:[%s1164_s4 + $0x18] sm:$0x70] %v878_v47  ;;  %v883_v48 = vmul.f32 1.442695, %v878_v47 }
 0x3c2   :  { %977 = vpow2.f32 %v883_v48 }
 0x3cd   :  { %v976_v49 = vpop.eup %975 }
 0x3ce   :  { %v949_v50 = vadd.f32 -1.0, %v976_v49 }
 0x3cf   :  { %v978_v51 = vpop.eup %977 }
 0x3d0   :  { %v950_v52 = vadd.f32 -1.0, %v978_v51  ;;  %v887_v53 = vmax.f32 %v949_v50, 0.0 }
 0x3d2   :  { %v888_v18 = vmax.f32 %v950_v52, 0.0 }
 0x3d4   :  { %v891_v54 = vcombine.high %v887_v53, %v888_v18 }
 0x3d6   :  { %v898_v55 = vrot.slane %v891_v54, %v1076_v11 }
 0x3d8   :  { %v899_v56 = vcombine.high %v898_v55, %v898_v55 }
 0x3da   :  { %v906_v3 = vrot.slane %v899_v56, %v1076_v11 }
 0x3dc   :  { %v907_v20 = vcombine.high %v906_v3, %v906_v3 }
 0x3de   :  { %951 = vst.msk [vmem:[%s1164_s4 + $0x17] ss:$8 sm:$0x3] %vm1080_vm5, %v907_v20 }

</bundles_post_ra>
